<compile_context>
chip_gen: v5e
topology: v5e:2x2
jax: 0.10.0
libtpu: 0.0.40
codegen_flags: <defaults>
</compile_context>

<pallas_src>
import jax
import jax.numpy as jnp
from jax.experimental import pallas as pl
from jax.experimental.pallas import tpu as pltpu


def _round_up(x, m):
    return (x + m - 1) // m * m


def _autoencoder_kernel(x_ref,
                        w1_ref, b1_ref,
                        w2_ref, b2_ref,
                        w34_ref, b34_ref,
                        w5_ref, b5_ref,
                        w6_ref, b6_ref,
                        o_ref):
    """5-matmul MLP forward for one batch tile, fully resident in VMEM."""
    x = x_ref[...].astype(jnp.float32)

    def linear(h, w_ref, b_ref, relu):
        y = jnp.dot(h, w_ref[...].astype(jnp.float32),
                    preferred_element_type=jnp.float32)
        y = y + b_ref[...].astype(jnp.float32)          # b is (1, out) -> broadcast
        if relu:
            y = jnp.maximum(y, 0.0)
        return y

    # encoder
    h = linear(x, w1_ref, b1_ref, relu=True)     # (bm, 64)
    h = linear(h, w2_ref, b2_ref, relu=True)     # (bm, 32)
    # Linear(32,16) -> Linear(16,32) folded into one 32x32 layer (no ReLU between
    # them in the original module); the ReLU after the decoder's first layer stays.
    h = linear(h, w34_ref, b34_ref, relu=True)   # (bm, 32)
    # decoder (rest)
    h = linear(h, w5_ref, b5_ref, relu=True)     # (bm, 64)
    h = linear(h, w6_ref, b6_ref, relu=False)    # (bm, D)  -- decoded

    o_ref[...] = h.astype(o_ref.dtype)


def _pick_block_m(B, D, requested, vmem_budget_bytes=24 * 1024 * 1024):
    """Largest batch tile that fits the VMEM budget (f32), multiple of 8."""
    # Per batch row (f32):
    #   x  : 2 buffers x D x 4B   (double-buffered input DMA)
    #   out: 2 buffers x D x 4B   (double-buffered output DMA)
    #   live intermediates inside the body (few 64-wide f32 rows) ~ 1 KiB slack
    per_row_bytes = 16 * D + 1024
    cap = max(8, (vmem_budget_bytes // per_row_bytes) // 8 * 8)
    bm = min(requested, cap)
    # Never bigger than the (padded) batch itself.
    bm = max(8, min(bm, _round_up(B, 8)))
    # Keep >= 2 grid steps when the batch allows it so the v7x megacore
    # (2 TensorCores/chip) can shard the "parallel" batch axis.
    if B >= 16:
        bm = min(bm, _round_up(pl.cdiv(B, 2), 8))
    return bm


def autoencoder_forward(x, params, *, block_m=512,
                        vmem_limit_bytes=48 * 1024 * 1024):
    """x: (B, D) float32.  params: 6 x (W, b), W as (in, out), b as (1, out)."""
    B, D = x.shape
    (w1, b1), (w2, b2), (w3, b3), (w4, b4), (w5, b5), (w6, b6) = params

    # Fold the ReLU-free 32 -> 16 -> 32 bottleneck into a single 32x32 layer.
    hi = jax.lax.Precision.HIGHEST
    w34 = jnp.dot(w3, w4, precision=hi)                 # (32, 32)
    b34 = jnp.dot(b3, w4, precision=hi) + b4            # (1, 32)
    flat = [w1, b1, w2, b2, w34, b34, w5, b5, w6, b6]

    bm = _pick_block_m(B, D, block_m)
    B_pad = _round_up(B, bm)
    x_p = x if B_pad == B else jnp.pad(x, ((0, B_pad - B), (0, 0)))

    # Weights / biases are tiny: every grid step sees the full array (the
    # revisited block stays VMEM-resident across steps).
    def full_spec(arr):
        return pl.BlockSpec(arr.shape, lambda i: (0,) * arr.ndim)

    in_specs = [pl.BlockSpec((bm, D), lambda i: (i, 0))]
    in_specs += [full_spec(a) for a in flat]
    out_spec = pl.BlockSpec((bm, D), lambda i: (i, 0))

    out = pl.pallas_call(
        _autoencoder_kernel,
        out_shape=jax.ShapeDtypeStruct((B_pad, D), x.dtype),
        grid_spec=pltpu.PrefetchScalarGridSpec(
            num_scalar_prefetch=0,
            grid=(B_pad // bm,),
            in_specs=in_specs,
            out_specs=out_spec,
        ),
        compiler_params=pltpu.CompilerParams(
            dimension_semantics=("parallel",),
            vmem_limit_bytes=vmem_limit_bytes),
    )(x_p, *flat)

    return out[:B] if B_pad != B else out


def init_params(key, input_dim):
    """Deterministic init mimicking nn.Linear defaults (uniform +/- 1/sqrt(fan_in))."""
    dims = [input_dim, 64, 32, 16, 32, 64, input_dim]
    params = []
    for i in range(len(dims) - 1):
        fan_in, fan_out = dims[i], dims[i + 1]
        key, kw, kb = jax.random.split(key, 3)
        bound = 1.0 / jnp.sqrt(jnp.float32(fan_in))
        w = jax.random.uniform(kw, (fan_in, fan_out), jnp.float32, -bound, bound)
        b = jax.random.uniform(kb, (1, fan_out), jnp.float32, -bound, bound)
        params.append((w, b))
    return params


def reference_forward(x, params):
    """Unfolded 6-layer reference, matching the PyTorch module exactly."""
    h = x
    for idx, (w, b) in enumerate(params):
        h = h @ w + b
        # ReLU after layers 0,1 (encoder) and 3,4 (decoder); not after 2 or 5.
        if idx in (0, 1, 3, 4):
            h = jnp.maximum(h, 0.0)
    return h


if __name__ == "__main__":
    key = jax.random.PRNGKey(0)
    input_dim = 32
    batch = 8

    k_x, k_p = jax.random.split(key)
    x = jax.random.normal(k_x, (batch, input_dim), jnp.float32)
    params = init_params(k_p, input_dim)

    out = autoencoder_forward(x, params)
    out = jax.block_until_ready(out)

    ref = reference_forward(x, params)
    assert out.shape == (batch, input_dim)
    # Tolerance slightly relaxed vs. before: folding W3@W4 reassociates the
    # 16-wide contraction (numerically equivalent up to fp rounding).
    assert jnp.allclose(out, ref, atol=1e-4, rtol=1e-4), "mismatch vs reference"

    print("KERNEL_OK")
</pallas_src>

<mosaic_0001>
module attributes {stable_mosaic.version = 11 : i64} {
  func.func @_autoencoder_kernel(%arg0: i32, %arg1: memref<8x32xf32, #tpu.memory_space<vmem>>, %arg2: memref<32x64xf32, #tpu.memory_space<vmem>>, %arg3: memref<1x64xf32, #tpu.memory_space<vmem>>, %arg4: memref<64x32xf32, #tpu.memory_space<vmem>>, %arg5: memref<1x32xf32, #tpu.memory_space<vmem>>, %arg6: memref<32x32xf32, #tpu.memory_space<vmem>>, %arg7: memref<1x32xf32, #tpu.memory_space<vmem>>, %arg8: memref<32x64xf32, #tpu.memory_space<vmem>>, %arg9: memref<1x64xf32, #tpu.memory_space<vmem>>, %arg10: memref<64x32xf32, #tpu.memory_space<vmem>>, %arg11: memref<1x32xf32, #tpu.memory_space<vmem>>, %arg12: memref<8x32xf32, #tpu.memory_space<vmem>>) attributes {dimension_semantics = [#tpu.dimension_semantics<parallel>], iteration_bounds = array<i64: 1>, scalar_prefetch = 0 : i64, scratch_operands = 0 : i64, tpu.core_type = #tpu.core_type<tc>, window_params = [{transform_indices = @transform_0, window_bounds = array<i64: 8, 32>}, {pipeline_mode = #tpu.pipeline_mode<synchronous>, transform_indices = @transform_1, window_bounds = array<i64: 32, 64>}, {pipeline_mode = #tpu.pipeline_mode<synchronous>, transform_indices = @transform_2, window_bounds = array<i64: 1, 64>}, {pipeline_mode = #tpu.pipeline_mode<synchronous>, transform_indices = @transform_3, window_bounds = array<i64: 64, 32>}, {pipeline_mode = #tpu.pipeline_mode<synchronous>, transform_indices = @transform_4, window_bounds = array<i64: 1, 32>}, {pipeline_mode = #tpu.pipeline_mode<synchronous>, transform_indices = @transform_5, window_bounds = array<i64: 32, 32>}, {pipeline_mode = #tpu.pipeline_mode<synchronous>, transform_indices = @transform_6, window_bounds = array<i64: 1, 32>}, {pipeline_mode = #tpu.pipeline_mode<synchronous>, transform_indices = @transform_7, window_bounds = array<i64: 32, 64>}, {pipeline_mode = #tpu.pipeline_mode<synchronous>, transform_indices = @transform_8, window_bounds = array<i64: 1, 64>}, {pipeline_mode = #tpu.pipeline_mode<synchronous>, transform_indices = @transform_9, window_bounds = array<i64: 64, 32>}, {pipeline_mode = #tpu.pipeline_mode<synchronous>, transform_indices = @transform_10, window_bounds = array<i64: 1, 32>}, {transform_indices = @transform_11, window_bounds = array<i64: 8, 32>}]} {
    %c0 = arith.constant 0 : index
    %c0_0 = arith.constant 0 : index
    %0 = vector.load %arg1[%c0, %c0_0] : memref<8x32xf32, #tpu.memory_space<vmem>>, vector<8x32xf32>
    %c0_1 = arith.constant 0 : index
    %c0_2 = arith.constant 0 : index
    %1 = vector.load %arg2[%c0_1, %c0_2] : memref<32x64xf32, #tpu.memory_space<vmem>>, vector<32x64xf32>
    %cst = arith.constant dense<0.000000e+00> : vector<8x64xf32>
    %2 = tpu.matmul %0, %1, %cst {dimension_numbers = #tpu.dot_dimension_numbers<[1], [0], [0], [1], [0, 0, 1, 1], [], []>} : vector<8x32xf32>, vector<32x64xf32>, vector<8x64xf32> -> vector<8x64xf32>
    %c0_3 = arith.constant 0 : index
    %c0_4 = arith.constant 0 : index
    %3 = vector.load %arg3[%c0_3, %c0_4] : memref<1x64xf32, #tpu.memory_space<vmem>>, vector<1x64xf32>
    %4 = vector.broadcast %3 : vector<1x64xf32> to vector<8x64xf32>
    %5 = arith.addf %2, %4 : vector<8x64xf32>
    %cst_5 = arith.constant 0.000000e+00 : f32
    %6 = vector.broadcast %cst_5 : f32 to vector<8x64xf32>
    %7 = arith.maximumf %5, %6 : vector<8x64xf32>
    %c0_6 = arith.constant 0 : index
    %c0_7 = arith.constant 0 : index
    %8 = vector.load %arg4[%c0_6, %c0_7] : memref<64x32xf32, #tpu.memory_space<vmem>>, vector<64x32xf32>
    %cst_8 = arith.constant dense<0.000000e+00> : vector<8x32xf32>
    %9 = tpu.matmul %7, %8, %cst_8 {dimension_numbers = #tpu.dot_dimension_numbers<[1], [0], [0], [1], [0, 0, 1, 1], [], []>} : vector<8x64xf32>, vector<64x32xf32>, vector<8x32xf32> -> vector<8x32xf32>
    %c0_9 = arith.constant 0 : index
    %c0_10 = arith.constant 0 : index
    %10 = vector.load %arg5[%c0_9, %c0_10] : memref<1x32xf32, #tpu.memory_space<vmem>>, vector<1x32xf32>
    %11 = vector.broadcast %10 : vector<1x32xf32> to vector<8x32xf32>
    %12 = arith.addf %9, %11 : vector<8x32xf32>
    %cst_11 = arith.constant 0.000000e+00 : f32
    %13 = vector.broadcast %cst_11 : f32 to vector<8x32xf32>
    %14 = arith.maximumf %12, %13 : vector<8x32xf32>
    %c0_12 = arith.constant 0 : index
    %c0_13 = arith.constant 0 : index
    %15 = vector.load %arg6[%c0_12, %c0_13] : memref<32x32xf32, #tpu.memory_space<vmem>>, vector<32x32xf32>
    %cst_14 = arith.constant dense<0.000000e+00> : vector<8x32xf32>
    %16 = tpu.matmul %14, %15, %cst_14 {dimension_numbers = #tpu.dot_dimension_numbers<[1], [0], [0], [1], [0, 0, 1, 1], [], []>} : vector<8x32xf32>, vector<32x32xf32>, vector<8x32xf32> -> vector<8x32xf32>
    %c0_15 = arith.constant 0 : index
    %c0_16 = arith.constant 0 : index
    %17 = vector.load %arg7[%c0_15, %c0_16] : memref<1x32xf32, #tpu.memory_space<vmem>>, vector<1x32xf32>
    %18 = vector.broadcast %17 : vector<1x32xf32> to vector<8x32xf32>
    %19 = arith.addf %16, %18 : vector<8x32xf32>
    %cst_17 = arith.constant 0.000000e+00 : f32
    %20 = vector.broadcast %cst_17 : f32 to vector<8x32xf32>
    %21 = arith.maximumf %19, %20 : vector<8x32xf32>
    %c0_18 = arith.constant 0 : index
    %c0_19 = arith.constant 0 : index
    %22 = vector.load %arg8[%c0_18, %c0_19] : memref<32x64xf32, #tpu.memory_space<vmem>>, vector<32x64xf32>
    %cst_20 = arith.constant dense<0.000000e+00> : vector<8x64xf32>
    %23 = tpu.matmul %21, %22, %cst_20 {dimension_numbers = #tpu.dot_dimension_numbers<[1], [0], [0], [1], [0, 0, 1, 1], [], []>} : vector<8x32xf32>, vector<32x64xf32>, vector<8x64xf32> -> vector<8x64xf32>
    %c0_21 = arith.constant 0 : index
    %c0_22 = arith.constant 0 : index
    %24 = vector.load %arg9[%c0_21, %c0_22] : memref<1x64xf32, #tpu.memory_space<vmem>>, vector<1x64xf32>
    %25 = vector.broadcast %24 : vector<1x64xf32> to vector<8x64xf32>
    %26 = arith.addf %23, %25 : vector<8x64xf32>
    %cst_23 = arith.constant 0.000000e+00 : f32
    %27 = vector.broadcast %cst_23 : f32 to vector<8x64xf32>
    %28 = arith.maximumf %26, %27 : vector<8x64xf32>
    %c0_24 = arith.constant 0 : index
    %c0_25 = arith.constant 0 : index
    %29 = vector.load %arg10[%c0_24, %c0_25] : memref<64x32xf32, #tpu.memory_space<vmem>>, vector<64x32xf32>
    %cst_26 = arith.constant dense<0.000000e+00> : vector<8x32xf32>
    %30 = tpu.matmul %28, %29, %cst_26 {dimension_numbers = #tpu.dot_dimension_numbers<[1], [0], [0], [1], [0, 0, 1, 1], [], []>} : vector<8x64xf32>, vector<64x32xf32>, vector<8x32xf32> -> vector<8x32xf32>
    %c0_27 = arith.constant 0 : index
    %c0_28 = arith.constant 0 : index
    %31 = vector.load %arg11[%c0_27, %c0_28] : memref<1x32xf32, #tpu.memory_space<vmem>>, vector<1x32xf32>
    %32 = vector.broadcast %31 : vector<1x32xf32> to vector<8x32xf32>
    %33 = arith.addf %30, %32 : vector<8x32xf32>
    %c0_29 = arith.constant 0 : index
    %c0_30 = arith.constant 0 : index
    %34 = vector.load %arg12[%c0_29, %c0_30] : memref<8x32xf32, #tpu.memory_space<vmem>>, vector<8x32xf32>
    tpu.vector_store %arg12[%c0_29, %c0_30], %33 {strides = array<i32>} : memref<8x32xf32, #tpu.memory_space<vmem>>, vector<8x32xf32>,
    return
  }
  func.func @transform_0(%arg0: i32) -> (i32, i32) {
    %c0_i32 = arith.constant 0 : i32
    %c0_i32_0 = arith.constant 0 : i32
    return %arg0, %c0_i32 : i32, i32
  }
  func.func @transform_1(%arg0: i32) -> (i32, i32) {
    %c0_i32 = arith.constant 0 : i32
    %c0_i32_0 = arith.constant 0 : i32
    %c0_i32_1 = arith.constant 0 : i32
    return %c0_i32, %c0_i32_0 : i32, i32
  }
  func.func @transform_2(%arg0: i32) -> (i32, i32) {
    %c0_i32 = arith.constant 0 : i32
    %c0_i32_0 = arith.constant 0 : i32
    %c0_i32_1 = arith.constant 0 : i32
    return %c0_i32, %c0_i32_0 : i32, i32
  }
  func.func @transform_3(%arg0: i32) -> (i32, i32) {
    %c0_i32 = arith.constant 0 : i32
    %c0_i32_0 = arith.constant 0 : i32
    %c0_i32_1 = arith.constant 0 : i32
    return %c0_i32, %c0_i32_0 : i32, i32
  }
  func.func @transform_4(%arg0: i32) -> (i32, i32) {
    %c0_i32 = arith.constant 0 : i32
    %c0_i32_0 = arith.constant 0 : i32
    %c0_i32_1 = arith.constant 0 : i32
    return %c0_i32, %c0_i32_0 : i32, i32
  }
  func.func @transform_5(%arg0: i32) -> (i32, i32) {
    %c0_i32 = arith.constant 0 : i32
    %c0_i32_0 = arith.constant 0 : i32
    %c0_i32_1 = arith.constant 0 : i32
    return %c0_i32, %c0_i32_0 : i32, i32
  }
  func.func @transform_6(%arg0: i32) -> (i32, i32) {
    %c0_i32 = arith.constant 0 : i32
    %c0_i32_0 = arith.constant 0 : i32
    %c0_i32_1 = arith.constant 0 : i32
    return %c0_i32, %c0_i32_0 : i32, i32
  }
  func.func @transform_7(%arg0: i32) -> (i32, i32) {
    %c0_i32 = arith.constant 0 : i32
    %c0_i32_0 = arith.constant 0 : i32
    %c0_i32_1 = arith.constant 0 : i32
    return %c0_i32, %c0_i32_0 : i32, i32
  }
  func.func @transform_8(%arg0: i32) -> (i32, i32) {
    %c0_i32 = arith.constant 0 : i32
    %c0_i32_0 = arith.constant 0 : i32
    %c0_i32_1 = arith.constant 0 : i32
    return %c0_i32, %c0_i32_0 : i32, i32
  }
  func.func @transform_9(%arg0: i32) -> (i32, i32) {
    %c0_i32 = arith.constant 0 : i32
    %c0_i32_0 = arith.constant 0 : i32
    %c0_i32_1 = arith.constant 0 : i32
    return %c0_i32, %c0_i32_0 : i32, i32
  }
  func.func @transform_10(%arg0: i32) -> (i32, i32) {
    %c0_i32 = arith.constant 0 : i32
    %c0_i32_0 = arith.constant 0 : i32
    %c0_i32_1 = arith.constant 0 : i32
    return %c0_i32, %c0_i32_0 : i32, i32
  }
  func.func @transform_11(%arg0: i32) -> (i32, i32) {
    %c0_i32 = arith.constant 0 : i32
    %c0_i32_0 = arith.constant 0 : i32
    return %arg0, %c0_i32 : i32, i32
  }
}

</mosaic_0001>

<bundles_post_ra>
// kernel: tpu_custom_call.1
= control target key start
LH: loop header
LB: loop body
LE: loop exit
PB: predicated region body
PF: predicated region fallthrough
CT: control target
= control target key end

     0   :  { %vm48_vm0 = vcmask 261120   ;;  %s435_s0 = inlined_call_operand.vmem [shape: f32[8,32], index: 0, kind: input, shape index: {}]   ;;  %s436_s1 = inlined_call_operand.vmem [shape: f32[32,64], index: 1, kind: input, shape index: {}]   ;;  %s437_s2 = inlined_call_operand.vmem [shape: f32[1,64], index: 2, kind: input, shape index: {}]   ;;  %s438_s3 = inlined_call_operand.vmem [shape: f32[64,32], index: 3, kind: input, shape index: {}]   ;;  %s439_s4 = inlined_call_operand.vmem [shape: f32[1,32], index: 4, kind: input, shape index: {}]   ;;  %s440_s5 = inlined_call_operand.vmem [shape: f32[32,32], index: 5, kind: input, shape index: {}]   ;;  %s441_s6 = inlined_call_operand.vmem [shape: f32[1,32], index: 6, kind: input, shape index: {}]   ;;  %s442_s7 = inlined_call_operand.vmem [shape: f32[32,64], index: 7, kind: input, shape index: {}]   ;;  %s443_s8 = inlined_call_operand.vmem [shape: f32[1,64], index: 8, kind: input, shape index: {}]   ;;  %s444_s9 = inlined_call_operand.vmem [shape: f32[64,32], index: 9, kind: input, shape index: {}]   ;;  %s445_s10 = inlined_call_operand.vmem [shape: f32[1,32], index: 10, kind: input, shape index: {}]   ;;  %s446_s11 = inlined_call_operand.hbm [shape: f32[8,32], index: 11, kind: output, shape index: {}]  }
   0x1   :  { %v43_v0 = vld [vmem:[%s436_s1 + $0x18] sm:$0xff]  ;;  %v42_v1 = vld [vmem:[%s436_s1 + $0x10] sm:$0xff]  ;;  %v41_v3 = vld [vmem:[%s436_s1 + $0x8] sm:$0xff] }
   0x2   :  { %64 = vmatpush.msra.mxu2 %v43_v0  ;;  %v80_v2 = vld [vmem:[%s438_s3 + $0x38] sm:$0xff]  ;;  %v40_v4 = vld [vmem:[%s436_s1] sm:$0xff]  ;;  %v79_v5 = vld [vmem:[%s438_s3 + $0x30] sm:$0xff] }
   0x3   :  { %97 = vmatpush.msra.mxu1 %v80_v2  ;;  %v39_v6 = vld [vmem:[%s435_s0] sm:$0xff]  ;;  %v78_v7 = vld [vmem:[%s438_s3 + $0x28] sm:$0xff] }
   0x4   :  { %65 = vmatpush.msra.mxu2 %v42_v1  ;;  %v77_v8 = vld [vmem:[%s438_s3 + $0x20] sm:$0xff] }
   0x5   :  { %98 = vmatpush.msra.mxu1 %v79_v5 }
   0x6   :  { %66 = vmatpush.msra.mxu2 %v41_v3 }
   0x7   :  { %16 = vsyncpa [#allocation3], 0  ;;  %99 = vmatpush.msra.mxu1 %v78_v7  ;;  %v76_v9 = vld [vmem:[%s438_s3 + $0x18] sm:$0xff]  ;;  %v75_v10 = vld [vmem:[%s438_s3 + $0x10] sm:$0xff]  ;;  %vm85_vm1 = vcmask 523264   ;;  %s263_s1 = smov [#allocation2]  }
   0x8   :  { %67 = vmatpush.msra.mxu2 %v40_v4  ;;  %v74_v11 = vld [vmem:[%s438_s3 + $0x8] sm:$0xff]  ;;  %v73_v12 = vld [vmem:[%s438_s3] sm:$0xff]  ;;  %v113_v13 = vld [vmem:[%s440_s5 + $0x18] sm:$0xff] }
   0x9   :  { %226 = vmatmul.msk.f32.vlgmr.msra.gmra.mxu2 %vm48_vm0, %v39_v6  ;;  %100 = vmatpush.msra.mxu1 %v77_v8  ;;  %v112_v14 = vld [vmem:[%s440_s5 + $0x10] sm:$0xff]  ;;  %v232_v15 = vld [vmem:[%s437_s2] ss:$0 sm:$0xff]  ;;  %v111_v19 = vld [vmem:[%s440_s5 + $0x8] sm:$0xff] }
   0xa   :  { %133 = vmatpush.msrb.mxu2 %v113_v13  ;;  %v110_v20 = vld [vmem:[%s440_s5] sm:$0xff]  ;;  %v145_v21 = vld [vmem:[%s442_s7 + $0x18] sm:$0xff]  ;;  %v144_v26 = vld [vmem:[%s442_s7 + $0x10] sm:$0xff]  ;;  %s215_s5 = sshll.u32 %s263_s1, 4  ;;  %s216_s5 = int_to_ptr.vmem [resolvable:$true] %s215_s5 }
   0xb   :  { %101 = vmatpush.msra.mxu1 %v76_v9  ;;  %165 = vmatpush.msra.mxu3 %v145_v21  ;;  %v233_v22 = vld [vmem:[%s439_s4] ss:$0 sm:$0xff]  ;;  %v143_v27 = vld [vmem:[%s442_s7 + $0x8] sm:$0xff]  ;;  %v181_v29 = vld [vmem:[%s444_s9 + $0x38] sm:$0xff] }
   0xc   :  { %134 = vmatpush.msrb.mxu2 %v112_v14  ;;  %v142_v28 = vld [vmem:[%s442_s7] sm:$0xff]  ;;  %v180_v30 = vld [vmem:[%s444_s9 + $0x30] sm:$0xff]  ;;  %197 = vmatpush.msra.mxu0 %v181_v29  ;;  %v179_v31 = vld [vmem:[%s444_s9 + $0x28] sm:$0xff] }
   0xd   :  { %102 = vmatpush.msra.mxu1 %v75_v10  ;;  %166 = vmatpush.msra.mxu3 %v144_v26  ;;  %v178_v32 = vld [vmem:[%s444_s9 + $0x20] sm:$0xff]  ;;  %v177_v33 = vld [vmem:[%s444_s9 + $0x18] sm:$0xff]  ;;  %v176_v38 = vld [vmem:[%s444_s9 + $0x10] sm:$0xff] }
   0xe   :  { %135 = vmatpush.msrb.mxu2 %v111_v19  ;;  %198 = vmatpush.msra.mxu0 %v180_v30  ;;  %v234_v34 = vld [vmem:[%s441_s6] ss:$0 sm:$0xff]  ;;  %v175_v39 = vld [vmem:[%s444_s9 + $0x8] sm:$0xff] }
   0xf   :  { %103 = vmatpush.msra.mxu1 %v74_v11  ;;  %167 = vmatpush.msra.mxu3 %v143_v27  ;;  %v174_v40 = vld [vmem:[%s444_s9] sm:$0xff]  ;;  %s217_s9 = sshll.u32 %s446_s11, 4  ;;  %s218_s9 = int_to_ptr.hbm [resolvable:$true] %s217_s9 }
  0x10   :  { %136 = vmatpush.msrb.mxu2 %v110_v20  ;;  %199 = vmatpush.msra.mxu0 %v179_v31  ;;  %v235_v41 = vld [vmem:[%s443_s8] ss:$0 sm:$0xff] }
  0x11   :  { %104 = vmatpush.msra.mxu1 %v73_v12  ;;  %168 = vmatpush.msra.mxu3 %v142_v28  ;;  %v236_v45 = vld [vmem:[%s445_s10] ss:$0 sm:$0xff] }
  0x12   :  { %200 = vmatpush.msra.mxu0 %v178_v32 }
  0x14   :  { %201 = vmatpush.msra.mxu0 %v177_v33 }
  0x16   :  { %202 = vmatpush.msra.mxu0 %v176_v38 }
  0x18   :  { %203 = vmatpush.msra.mxu0 %v175_v39 }
  0x1a   :  { %204 = vmatpush.msra.mxu0 %v174_v40 }
  0x8c   :  { %v69_v16 = vpop.f32.mrf.mxu2 }
  0x8d   :  { %v70_v17 = vadd.f32 %v232_v15, %v69_v16 }
  0x8f   :  { %v72_v18 = vmax.f32 %v70_v17, 0.0 }
  0x91   :  { %227 = vmatmul.msk.f32.vlgmr.msra.gmra.mxu1 %vm85_vm1, %v72_v18 }
 0x10e   :  { %v106_v23 = vpop.f32.mrf.mxu1 }
 0x10f   :  { %v107_v24 = vadd.f32 %v233_v22, %v106_v23 }
 0x111   :  { %v109_v25 = vmax.f32 %v107_v24, 0.0 }
 0x113   :  { %228 = vmatmul.msk.f32.vlgmr.msrb.gmra.mxu2 %vm48_vm0, %v109_v25 }
 0x196   :  { %v138_v35 = vpop.f32.mrf.mxu2 }
 0x197   :  { %v139_v36 = vadd.f32 %v234_v34, %v138_v35 }
 0x199   :  { %v141_v37 = vmax.f32 %v139_v36, 0.0 }
 0x19b   :  { %229 = vmatmul.msk.f32.vlgmr.msra.gmra.mxu3 %vm48_vm0, %v141_v37 }
 0x21e   :  { %v170_v42 = vpop.f32.mrf.mxu3 }
 0x21f   :  { %v171_v43 = vadd.f32 %v235_v41, %v170_v42 }
 0x221   :  { %v173_v44 = vmax.f32 %v171_v43, 0.0 }
 0x223   :  { %230 = vmatmul.msk.f32.vlgmr.msra.gmra.mxu0 %vm85_vm1, %v173_v44 }
 0x2a0   :  { %v206_v46 = vpop.f32.mrf.mxu0 }
 0x2a1   :  { %v207_v47 = vadd.f32 %v236_v45, %v206_v46 }
 0x2a3   :  { %209 = vst.msk [vmem:[#allocation2] sm:$0xff] %vm48_vm0, %v207_v47 }
 0x2a4   :  { %220 = dma.vmem_to_hbm [thread:$0]  %s216_s5, 128, %s218_s9, [#allocation3]  }
 0x2a5   :  { %261 = dma.done.wait [#allocation3], 128  }
 0x2a6   :  { %262 = vsyncadd [#allocation3], 4294967168 }
 0x2a7   :  { %225 = vsyncpa [#allocation3], 1 }

</bundles_post_ra>
